<compile_context>
chip_gen: v5e
topology: v5e:2x2
jax: 0.10.0
libtpu: 0.0.40
codegen_flags: <defaults>
</compile_context>

<pallas_src>
import jax
import jax.numpy as jnp
from jax import lax
from jax.experimental import pallas as pl
from jax.experimental.pallas import tpu as pltpu

EPS = 1e-5

# Double-buffered (in + out) block budget; sized conservatively for v7x's
# 64 MiB physical VMEM (v5e/v6e have 128 MiB and simply use the same blocks).
_VMEM_BLOCK_BUDGET = 40 * 1024 * 1024


def _ccbn_kernel(x_ref, gain_ref, bias_ref, o_ref):
    # x_ref: (B, TC, HW)   gain_ref/bias_ref: (B, TC, 1) float32
    x = x_ref[...]
    count = x_ref.shape[0] * x_ref.shape[2]
    inv_count = 1.0 / float(count)

    # --- per-channel batch stats over (B, HW), f32 accumulation -------------
    s = jnp.sum(x, axis=(0, 2), keepdims=True, dtype=jnp.float32)        # (1,TC,1)
    s2 = jnp.sum(x * x, axis=(0, 2), keepdims=True, dtype=jnp.float32)   # (1,TC,1)
    m = s * inv_count
    var = s2 * inv_count - m * m                                         # biased var
    inv = lax.rsqrt(var + EPS)                                           # (1,TC,1)

    # --- fold BN + conditional affine into one x*scale + shift pass ---------
    scale = gain_ref[...] * inv                                          # (B,TC,1) f32
    shift = bias_ref[...] - m * scale                                    # (B,TC,1) f32
    out = x * scale.astype(x.dtype) + shift.astype(x.dtype)
    o_ref[...] = out.astype(o_ref.dtype)


def _choose_channel_tile(B, C, HW, itemsize):
    """Largest channel tile whose double-buffered in+out blocks fit the budget.

    Must be either == C (full dim) or a multiple of 8 (sublane tiling rule)."""
    def db_bytes(tc):
        return 4 * B * tc * HW * itemsize      # 2x input block + 2x output block

    if db_bytes(C) <= _VMEM_BLOCK_BUDGET:
        return C
    best = None
    for tc in range(8, C, 8):
        if C % tc == 0 and db_bytes(tc) <= _VMEM_BLOCK_BUDGET:
            best = tc
    if best is not None:
        return best
    for tc in range(8, C, 8):                  # smallest legal tile as fallback
        if C % tc == 0:
            # TODO(synk): for slabs too large even at tc=8, split HW with an
            # 'arbitrary' reduction grid axis (two-phase stats) instead.
            return tc
    return C


def ccbn_forward(x, y, wg, bg, wb, bb):
    """x: (B, C, H, W) NCHW, y: (B, K).  wg/wb: (C, K), bg/bb: (C,)."""
    B, C, H, W = x.shape
    HW = H * W

    # Tiny conditional-affine matmuls hoisted out of the kernel (f32).
    y32 = y.astype(jnp.float32)
    gain = 1.0 + (y32 @ wg.T.astype(jnp.float32) + bg.astype(jnp.float32))   # (B, C)
    bias = y32 @ wb.T.astype(jnp.float32) + bb.astype(jnp.float32)           # (B, C)
    gain3 = gain.reshape(B, C, 1)
    bias3 = bias.reshape(B, C, 1)

    x3 = x.reshape(B, C, HW)
    itemsize = jnp.dtype(x.dtype).itemsize

    tc = _choose_channel_tile(B, C, HW, itemsize)
    grid = (C // tc,)
    block_bytes = B * tc * HW * itemsize
    vmem_limit = int(min(max(4 * block_bytes + (4 << 20), 16 << 20), 56 << 20))

    x_spec = pl.BlockSpec((B, tc, HW), lambda c: (0, c, 0))
    gb_spec = pl.BlockSpec((B, tc, 1), lambda c: (0, c, 0))

    out = pl.pallas_call(
        _ccbn_kernel,
        out_shape=jax.ShapeDtypeStruct((B, C, HW), x.dtype),
        grid=grid,
        in_specs=[x_spec, gb_spec, gb_spec],
        out_specs=x_spec,
        compiler_params=pltpu.CompilerParams(
            dimension_semantics=("parallel",),
            vmem_limit_bytes=vmem_limit,
        ),
        cost_estimate=pl.CostEstimate(
            flops=4 * B * C * HW,
            transcendentals=C,
            bytes_accessed=3 * B * C * HW * itemsize,
        ),
    )(x3, gain3, bias3)
    return out.reshape(B, C, H, W)


def ccbn_reference(x, y, wg, bg, wb, bb):
    """Pure-JAX reference mirroring the PyTorch module (training-mode BN)."""
    B, C, H, W = x.shape
    gain = (1.0 + (y @ wg.T + bg)).reshape(B, C, 1, 1)
    bias = (y @ wb.T + bb).reshape(B, C, 1, 1)
    m = jnp.mean(x, axis=(0, 2, 3), keepdims=True)
    v = jnp.mean(x * x, axis=(0, 2, 3), keepdims=True) - m * m
    xn = (x - m) * lax.rsqrt(v + EPS)
    return xn * gain + bias


if __name__ == "__main__":
    key = jax.random.PRNGKey(0)
    B, C, H, W = 2, 4, 16, 16          # output_size (channels) = 4
    K = 32                             # input_size (shared-embedding dim) = 32

    k1, k2, k3, k4, k5, k6 = jax.random.split(key, 6)
    x = jax.random.normal(k1, (B, C, H, W), dtype=jnp.float32)
    y = jax.random.normal(k2, (B, K), dtype=jnp.float32)

    # Deterministic "Linear" parameter init (which_linear(input_size, output_size))
    wg = 0.1 * jax.random.normal(k3, (C, K), dtype=jnp.float32)
    bg = 0.1 * jax.random.normal(k4, (C,), dtype=jnp.float32)
    wb = 0.1 * jax.random.normal(k5, (C, K), dtype=jnp.float32)
    bb = 0.1 * jax.random.normal(k6, (C,), dtype=jnp.float32)

    out = ccbn_forward(x, y, wg, bg, wb, bb)
    jax.block_until_ready(out)

    ref = ccbn_reference(x, y, wg, bg, wb, bb)
    assert out.shape == (B, C, H, W)
    assert jnp.allclose(out, ref, atol=1e-4, rtol=1e-4), "mismatch vs reference"

    print("KERNEL_OK")
</pallas_src>

<mosaic_0001>
module attributes {stable_mosaic.version = 11 : i64} {
  func.func @_ccbn_kernel(%arg0: i32, %arg1: memref<2x4x256xf32, #tpu.memory_space<vmem>>, %arg2: memref<2x4x1xf32, #tpu.memory_space<vmem>>, %arg3: memref<2x4x1xf32, #tpu.memory_space<vmem>>, %arg4: memref<2x4x256xf32, #tpu.memory_space<vmem>>) attributes {dimension_semantics = [#tpu.dimension_semantics<parallel>], iteration_bounds = array<i64: 1>, scalar_prefetch = 0 : i64, scratch_operands = 0 : i64, tpu.core_type = #tpu.core_type<tc>, window_params = [{transform_indices = @transform_0, window_bounds = array<i64: 2, 4, 256>}, {transform_indices = @transform_1, window_bounds = array<i64: 2, 4, 1>}, {transform_indices = @transform_2, window_bounds = array<i64: 2, 4, 1>}, {transform_indices = @transform_3, window_bounds = array<i64: 2, 4, 256>}]} {
    %c0 = arith.constant 0 : index
    %c0_0 = arith.constant 0 : index
    %c0_1 = arith.constant 0 : index
    %0 = vector.load %arg1[%c0, %c0_0, %c0_1] : memref<2x4x256xf32, #tpu.memory_space<vmem>>, vector<2x4x256xf32>
    %cst = arith.constant dense<0.000000e+00> : vector<4xf32>
    %1 = vector.multi_reduction <add>, %0, %cst [0, 2] : vector<2x4x256xf32> to vector<4xf32>
    %2 = vector.shape_cast %1 : vector<4xf32> to vector<1x4x1xf32>
    %3 = arith.mulf %0, %0 : vector<2x4x256xf32>
    %cst_2 = arith.constant dense<0.000000e+00> : vector<4xf32>
    %4 = vector.multi_reduction <add>, %3, %cst_2 [0, 2] : vector<2x4x256xf32> to vector<4xf32>
    %5 = vector.shape_cast %4 : vector<4xf32> to vector<1x4x1xf32>
    %cst_3 = arith.constant 0.001953125 : f32
    %6 = vector.broadcast %cst_3 : f32 to vector<1x4x1xf32>
    %7 = arith.mulf %2, %6 : vector<1x4x1xf32>
    %cst_4 = arith.constant 0.001953125 : f32
    %8 = vector.broadcast %cst_4 : f32 to vector<1x4x1xf32>
    %9 = arith.mulf %5, %8 : vector<1x4x1xf32>
    %10 = arith.mulf %7, %7 : vector<1x4x1xf32>
    %11 = arith.subf %9, %10 : vector<1x4x1xf32>
    %cst_5 = arith.constant 9.99999974E-6 : f32
    %12 = vector.broadcast %cst_5 : f32 to vector<1x4x1xf32>
    %13 = arith.addf %11, %12 : vector<1x4x1xf32>
    %14 = math.rsqrt %13 : vector<1x4x1xf32>
    %c0_6 = arith.constant 0 : index
    %c0_7 = arith.constant 0 : index
    %c0_8 = arith.constant 0 : index
    %15 = vector.load %arg2[%c0_6, %c0_7, %c0_8] : memref<2x4x1xf32, #tpu.memory_space<vmem>>, vector<2x4x1xf32>
    %16 = vector.broadcast %14 : vector<1x4x1xf32> to vector<2x4x1xf32>
    %17 = arith.mulf %15, %16 : vector<2x4x1xf32>
    %c0_9 = arith.constant 0 : index
    %c0_10 = arith.constant 0 : index
    %c0_11 = arith.constant 0 : index
    %18 = vector.load %arg3[%c0_9, %c0_10, %c0_11] : memref<2x4x1xf32, #tpu.memory_space<vmem>>, vector<2x4x1xf32>
    %19 = vector.broadcast %7 : vector<1x4x1xf32> to vector<2x4x1xf32>
    %20 = arith.mulf %19, %17 : vector<2x4x1xf32>
    %21 = arith.subf %18, %20 : vector<2x4x1xf32>
    %22 = vector.broadcast %17 : vector<2x4x1xf32> to vector<2x4x256xf32>
    %23 = arith.mulf %0, %22 : vector<2x4x256xf32>
    %24 = vector.broadcast %21 : vector<2x4x1xf32> to vector<2x4x256xf32>
    %25 = arith.addf %23, %24 : vector<2x4x256xf32>
    %c0_12 = arith.constant 0 : index
    %c0_13 = arith.constant 0 : index
    %c0_14 = arith.constant 0 : index
    %26 = vector.load %arg4[%c0_12, %c0_13, %c0_14] : memref<2x4x256xf32, #tpu.memory_space<vmem>>, vector<2x4x256xf32>
    tpu.vector_store %arg4[%c0_12, %c0_13, %c0_14], %25 {strides = array<i32>} : memref<2x4x256xf32, #tpu.memory_space<vmem>>, vector<2x4x256xf32>,
    return
  }
  func.func @transform_0(%arg0: i32) -> (i32, i32, i32) {
    %c0_i32 = arith.constant 0 : i32
    %c0_i32_0 = arith.constant 0 : i32
    %c0_i32_1 = arith.constant 0 : i32
    return %c0_i32, %arg0, %c0_i32_0 : i32, i32, i32
  }
  func.func @transform_1(%arg0: i32) -> (i32, i32, i32) {
    %c0_i32 = arith.constant 0 : i32
    %c0_i32_0 = arith.constant 0 : i32
    %c0_i32_1 = arith.constant 0 : i32
    return %c0_i32, %arg0, %c0_i32_0 : i32, i32, i32
  }
  func.func @transform_2(%arg0: i32) -> (i32, i32, i32) {
    %c0_i32 = arith.constant 0 : i32
    %c0_i32_0 = arith.constant 0 : i32
    %c0_i32_1 = arith.constant 0 : i32
    return %c0_i32, %arg0, %c0_i32_0 : i32, i32, i32
  }
  func.func @transform_3(%arg0: i32) -> (i32, i32, i32) {
    %c0_i32 = arith.constant 0 : i32
    %c0_i32_0 = arith.constant 0 : i32
    %c0_i32_1 = arith.constant 0 : i32
    return %c0_i32, %arg0, %c0_i32_0 : i32, i32, i32
  }
}

</mosaic_0001>

<bundles_post_ra>
// kernel: tpu_custom_call.1
= control target key start
LH: loop header
LB: loop body
LE: loop exit
PB: predicated region body
PF: predicated region fallthrough
CT: control target
= control target key end

     0   :  { %s251_s0 = inlined_call_operand.vmem [shape: f32[2,4,256], index: 0, kind: input, shape index: {}]   ;;  %s252_s1 = inlined_call_operand.vmem [shape: f32[2,4,1], index: 1, kind: input, shape index: {}]   ;;  %s253_s2 = inlined_call_operand.vmem [shape: f32[2,4,1], index: 2, kind: input, shape index: {}]   ;;  %s254_s3 = inlined_call_operand.hbm [shape: f32[2,4,256], index: 3, kind: output, shape index: {}]  }
   0x1   :  { %v213_v0 = vld [vmem:[%s251_s0] sm:$0xff]  ;;  %v218_v1 = vld [vmem:[%s251_s0 + $0x8] sm:$0xff] }
   0x2   :  { %8 = vsyncpa [#allocation3], 0  ;;  %19 = vst [vmem:[#allocation1] ss:$2 sm:$0xff] %v213_v0  ;;  %v40_v2 = vmul.f32 %v213_v0, %v213_v0  ;;  %vm30_vm0 = vcmask 1043456   ;;  %v41_v3 = vmul.f32 %v218_v1, %v218_v1  ;;  %v185_v26 = vmov 0  }
   0x3   :  { %23 = vst [vmem:[#allocation1 + $0x10] ss:$2 sm:$0xff] %v218_v1  ;;  %154 = vset.pattern.permute.xlu1 %v185_v26  ;;  %155 = vset.pattern.permute.xlu2 %v185_v26  ;;  %v79_v40 = vld [vmem:[%s252_s1] sm:$0xf]  ;;  %v80_v43 = vld [vmem:[%s252_s1 + $0x4] sm:$0xf] }
   0x4   :  { %156 = vset.pattern.permute.xlu0 %v185_v26  ;;  %v83_v44 = vld [vmem:[%s253_s2] sm:$0xf]  ;;  %v84_v49 = vld [vmem:[%s253_s2 + $0x4] sm:$0xf]  ;;  %v186_v51 = vmov 839922192  }
   0x5   :  { %v98_v52 = vunpack.c.l.s4 %v186_v51  ;;  %s187_s1 = smov [#allocation2]   ;;  %s137_s25 = sshll.u32 %s254_s3, 4  ;;  %s138_s25 = int_to_ptr.hbm [resolvable:$true] %s137_s25 }
   0x6   :  { %s135_s23 = sshll.u32 %s187_s1, 4  ;;  %s188_s26 = smov 128   ;;  %s136_s23 = int_to_ptr.vmem [resolvable:$true] %s135_s23 }
   0x7   :  { %v99_v54 = vunpack.c.0.s8 %v98_v52  ;;  %s189_s27 = smov 8  }
   0x9   :  { %v20_v4 = vld.sshfl [vmem:[#allocation1] sm:$0xff pattern:$0x75316420]  ;;  %v21_v5 = vld.sshfl [vmem:[#allocation1 + $0x8] sm:$0xff pattern:$0x75316420] }
   0xa   :  { %v24_v6 = vld.sshfl [vmem:[#allocation1 + $0x10] sm:$0xff pattern:$0x75316420]  ;;  %v25_v7 = vld.sshfl [vmem:[#allocation1 + $0x18] sm:$0xff pattern:$0x75316420] }
   0xb   :  { %v31_v8 = vsel %vm30_vm0, %v20_v4, 0.0  ;;  %v32_v9 = vsel %vm30_vm0, %v21_v5, 0.0  ;;  %v34_v10 = vsel %vm30_vm0, %v24_v6, 0.0  ;;  %44 = vst [vmem:[#allocation1] ss:$2 sm:$0xff] %v40_v2  ;;  %v36_v12 = vsel %vm30_vm0, %v25_v7, 0.0 }
   0xc   :  { %v33_v11 = vadd.f32 %v32_v9, %v31_v8  ;;  %48 = vst [vmem:[#allocation1 + $0x10] ss:$2 sm:$0xff] %v41_v3 }
   0xe   :  { %v35_v13 = vadd.f32 %v34_v10, %v33_v11 }
  0x10   :  { %v37_v14 = vadd.f32 %v36_v12, %v35_v13 }
  0x12   :  { %38 = vadd.xlane.f32.xlu0 %v37_v14  ;;  %v45_v15 = vld.sshfl [vmem:[#allocation1] sm:$0xff pattern:$0x75316420]  ;;  %v46_v16 = vld.sshfl [vmem:[#allocation1 + $0x8] sm:$0xff pattern:$0x75316420] }
  0x13   :  { %v49_v17 = vld.sshfl [vmem:[#allocation1 + $0x10] sm:$0xff pattern:$0x75316420]  ;;  %v50_v18 = vld.sshfl [vmem:[#allocation1 + $0x18] sm:$0xff pattern:$0x75316420] }
  0x14   :  { %v55_v19 = vsel %vm30_vm0, %v45_v15, 0.0  ;;  %v56_v20 = vsel %vm30_vm0, %v46_v16, 0.0  ;;  %v58_v21 = vsel %vm30_vm0, %v49_v17, 0.0  ;;  %v60_v23 = vsel %vm30_vm0, %v50_v18, 0.0 }
  0x15   :  { %v57_v22 = vadd.f32 %v56_v20, %v55_v19 }
  0x17   :  { %v59_v24 = vadd.f32 %v58_v21, %v57_v22 }
  0x19   :  { %v61_v25 = vadd.f32 %v60_v23, %v59_v24 }
  0x1b   :  { %62 = vadd.xlane.f32.xlu0 %v61_v25 }
  0x85   :  { %v39_v27 = vpop.xlane.xlu0 %38 }
  0x86   :  { %v64_v28 = vmul.f32 0.001953125, %v39_v27 }
  0x88   :  { %v66_v30 = vmul.f32 %v64_v28, %v64_v28 }
  0x8e   :  { %v63_v29 = vpop.xlane.xlu0 %62 }
  0x8f   :  { %v65_v31 = vmul.f32 0.001953125, %v63_v29 }
  0x91   :  { %v67_v32 = vsub.f32 %v65_v31, %v66_v30 }
  0x93   :  { %v68_v33 = vadd.f32 1e-05, %v67_v32 }
  0x95   :  { %157 = vrsqrt.f32 %v68_v33  ;;  %vm75_vm2 = vweird.f32 %v68_v33 }
  0x9b   :  { %v158_v34 = vpop.eup %157 }
  0x9c   :  { %v70_v35 = vmul.f32 %v158_v34, %v68_v33  ;;  %vm76_vm1 = vweird.f32 %v158_v34 }
  0x9d   :  { %vm77_vm3 = vmor %vm75_vm2, %vm76_vm1 }
  0x9e   :  { %v71_v36 = vmul.f32 %v158_v34, %v70_v35 }
  0xa0   :  { %v72_v37 = vmul.f32 0.5, %v71_v36 }
  0xa2   :  { %v73_v38 = vsub.f32 1.5, %v72_v37 }
  0xa4   :  { %v74_v39 = vmul.f32 %v158_v34, %v73_v38 }
  0xa6   :  { %v78_v41 = vsel %vm77_vm3, %v158_v34, %v74_v39 }
  0xa7   :  { %v81_v42 = vmul.f32 %v79_v40, %v78_v41  ;;  %v82_v46 = vmul.f32 %v80_v43, %v78_v41 }
  0xa9   :  { %91 = vperm.xlu1 %154, %v81_v42   ;;  %v85_v45 = vmul.f32 %v81_v42, %v64_v28  ;;  %v86_v48 = vmul.f32 %v82_v46, %v64_v28 }
  0xab   :  { %v87_v47 = vsub.f32 %v83_v44, %v85_v45  ;;  %v88_v50 = vsub.f32 %v84_v49, %v86_v48 }
  0xad   :  { %111 = vperm.xlu2 %155, %v87_v47  }
  0xb1   :  { %95 = vperm.xlu1 %154, %v82_v46  }
  0xb5   :  { %115 = vperm.xlu2 %155, %v88_v50  }
 0x107   :  { %v112_v53 = vpop.permute.xlu2 %111 }
 0x108   :  { %v120_v57 = vperm.slane %v112_v53, %v99_v54 }
 0x10f   :  { %v116_v60 = vpop.permute.xlu2 %115 }
 0x110   :  { %v124_v63 = vperm.slane %v116_v60, %v99_v54 }
 0x11b   :  { %v92_v55 = vpop.permute.xlu1 %91 }
 0x11c   :  { %v100_v56 = vperm.slane %v92_v55, %v99_v54 }
 0x11e   :  { %v107_v58 = vmul.f32 %v100_v56, %v213_v0 }
 0x120   :  { %v127_v59 = vadd.f32 %v120_v57, %v107_v58 }
 0x122   :  { %129 = vst [vmem:[#allocation2] sm:$0xff] %v127_v59 }
 0x123   :  { %v96_v61 = vpop.permute.xlu1 %95 }
 0x124   :  { %v104_v62 = vperm.slane %v96_v61, %v99_v54 }
 0x126   :  { %v108_v2 = vmul.f32 %v104_v62, %v218_v1 }
 0x128   :  { %v128_v3 = vadd.f32 %v124_v63, %v108_v2 }
 0x12a   :  { %130 = vst [vmem:[#allocation2 + $0x8] sm:$0xff] %v128_v3 }
 0x12b   :  { %143 = dma.vmem_to_hbm [thread:$0]  %s136_s23, 256, %s138_s25, [#allocation3], %s188_s26, %s188_s26, %s189_s27  }
 0x12c   :  { %183 = dma.done.wait [#allocation3], 256  }
 0x12d   :  { %184 = vsyncadd [#allocation3], 4294967040 }
 0x12e   :  { %148 = vsyncpa [#allocation3], 1 }

</bundles_post_ra>
